<compile_context>
chip_gen: v6e
topology: v6e:2x2x1
jax: 0.10.0
libtpu: 0.0.40
codegen_flags: <defaults>
</compile_context>

<pallas_src>
import functools

import jax
import jax.numpy as jnp
from jax.experimental import pallas as pl
from jax.experimental.pallas import tpu as pltpu


# ---------------------------------------------------------------------------
# "hparams" (deterministic, synthetic -- mirrors the module's __init__ fields)
# ---------------------------------------------------------------------------
GATE_POSITIVE_WEIGHT = 8.0          # hparams.gate_positive_weight
LOSS_FUNC = "MSELoss"               # hparams.loss_func ('MSELoss'|'SmoothL1Loss')
ALIGNMENT_LOSS_WEIGHT = 0.5         # hparams.alignment_loss_weight
ALIGNMENT_ENCODERWISE_MEAN = False  # hparams.alignment_encoderwise_mean
MEAN_WITHOUT_PADDING = True         # hparams.mean_without_padding -> reduction='sum'


def _softplus(x):
    # numerically stable log(1 + exp(x))
    return jnp.maximum(x, 0.0) + jnp.log(1.0 + jnp.exp(-jnp.abs(x)))


def _tacotron2_loss_kernel(mel_out_ref, mel_post_ref, mel_tgt_ref,
                           gate_out_ref, gate_tgt_ref,
                           align_out_ref, align_tgt_ref,
                           mel_sum_ref, gate_sum_ref, align_sum_ref,
                           macc, gacc, aacc,
                           *, pos_weight, loss_func):
    f32 = jnp.float32
    b = pl.program_id(1)            # batch-block index (arbitrary / reduction axis)
    nb = pl.num_programs(1)

    # ---- init per-core accumulators -----------------------------------------
    @pl.when(b == 0)
    def _init():
        macc[...] = jnp.zeros_like(macc)
        gacc[...] = jnp.zeros_like(gacc)
        aacc[...] = jnp.zeros_like(aacc)

    # ---- mel term: MSE / SmoothL1 on both decoder outputs (sum) -------------
    mo = mel_out_ref[...].astype(f32)           # (bb, n_mel, T) tile
    mp = mel_post_ref[...].astype(f32)
    mt = mel_tgt_ref[...].astype(f32)
    if loss_func == "MSELoss":
        d1 = mo - mt
        d2 = mp - mt
        e = d1 * d1 + d2 * d2
    elif loss_func == "SmoothL1Loss":
        d1 = jnp.abs(mo - mt)
        d2 = jnp.abs(mp - mt)
        e = (jnp.where(d1 < 1.0, 0.5 * d1 * d1, d1 - 0.5)
             + jnp.where(d2 < 1.0, 0.5 * d2 * d2, d2 - 0.5))
    else:
        raise ValueError(f"unsupported loss_func: {loss_func}")
    # lane/sublane-preserving accumulation: only VPU adds over the batch slab,
    # no per-step XLU reduction tree down to a scalar.
    macc[...] += jnp.sum(e, axis=0)

    # ---- alignment term: MSE(align_out.transpose(1,2), align_target), sum ---
    ao = align_out_ref[...].astype(f32)         # (bb, T_dec, T_enc) tile
    at = align_tgt_ref[...].astype(f32)         # (bb, T_enc, T_dec) tile
    da = ao - jnp.transpose(at, (0, 2, 1))      # in-kernel per-tile transpose (XLU)
    aacc[...] += jnp.sum(da * da, axis=0)

    # ---- gate term: BCEWithLogits(pos_weight), streamed per batch tile ------
    x = gate_out_ref[...].astype(f32)           # (bb, 1, Tg) tile
    y = gate_tgt_ref[...].astype(f32)
    bce = pos_weight * y * _softplus(-x) + (1.0 - y) * _softplus(x)
    gacc[...] += jnp.sum(bce, axis=0)           # -> (1, Tg)

    # ---- single full cross-lane reduce + flush, once per core ---------------
    @pl.when(b == nb - 1)
    def _flush():
        mel_sum_ref[...] = jnp.sum(macc[...], keepdims=True)
        gate_sum_ref[...] = jnp.sum(gacc[...], keepdims=True)
        align_sum_ref[...] = jnp.sum(aacc[...], keepdims=True)


def _largest_divisor_leq(n, cap):
    bb = max(1, min(int(cap), int(n)))
    while n % bb != 0:
        bb -= 1
    return bb


def tacotron2_loss(model_output, targets,
                   *,
                   pos_weight=GATE_POSITIVE_WEIGHT,
                   loss_func=LOSS_FUNC,
                   alignment_loss_weight=ALIGNMENT_LOSS_WEIGHT,
                   alignment_encoderwise_mean=ALIGNMENT_ENCODERWISE_MEAN,
                   mean_without_padding=MEAN_WITHOUT_PADDING):
    mel_out, mel_out_postnet, gate_out, alignment_out = model_output
    # The PyTorch module effectively requires alignment_target (alignment_loss
    # is returned unconditionally).
    mel_target, gate_target, output_lengths, alignment_target, *_ = targets

    B, n_mel, T = mel_out.shape
    _, T_dec, T_enc = alignment_out.shape
    _, At_enc, At_dec = alignment_target.shape
    Bg, Tg = gate_out.shape

    # Gate tensors -> (B, 1, Tg): the trailing two block dims then equal the
    # full array dims (no masked partial tiles from a sub-8 sublane block).
    gate_out3 = gate_out.reshape(Bg, 1, Tg)
    gate_target3 = gate_target.reshape(Bg, 1, Tg)

    # Split batch blocks across TensorCores when possible (2 TCs on v7x);
    # harmless sequential loop on single-core chips.
    n_split = 2 if (B % 2 == 0 and B >= 2) else 1
    per_core_B = B // n_split

    # ---- batch-block size: amortize the ~0.35us/step pipeline overhead while
    # ---- keeping the double-buffered working set under the tightest per-core
    # ---- VMEM (v7x: 64 MiB/TC). Budget ~24 MiB for the pipelined inputs.
    per_item_bytes = (
        3 * n_mel * T * mel_out.dtype.itemsize
        + T_dec * T_enc * alignment_out.dtype.itemsize
        + At_enc * At_dec * alignment_target.dtype.itemsize
        + 2 * Tg * gate_out.dtype.itemsize)
    vmem_budget = 24 << 20
    bb_cap = max(1, min(8, vmem_budget // max(1, 2 * per_item_bytes)))
    bb = _largest_divisor_leq(per_core_B, bb_cap)
    nb = per_core_B // bb            # batch blocks per core (reduction axis)

    batch_map3 = lambda s, b: (s * nb + b, 0, 0)
    part_map = lambda s, b: (s, 0, 0)

    grid_spec = pltpu.PrefetchScalarGridSpec(
        num_scalar_prefetch=0,
        grid=(n_split, nb),
        in_specs=[
            pl.BlockSpec((bb, n_mel, T), batch_map3),        # mel_out
            pl.BlockSpec((bb, n_mel, T), batch_map3),        # mel_out_postnet
            pl.BlockSpec((bb, n_mel, T), batch_map3),        # mel_target
            pl.BlockSpec((bb, 1, Tg), batch_map3),           # gate_out
            pl.BlockSpec((bb, 1, Tg), batch_map3),           # gate_target
            pl.BlockSpec((bb, T_dec, T_enc), batch_map3),    # alignment_out
            pl.BlockSpec((bb, At_enc, At_dec), batch_map3),  # alignment_target
        ],
        out_specs=(
            pl.BlockSpec((None, 1, 1), part_map),
            pl.BlockSpec((None, 1, 1), part_map),
            pl.BlockSpec((None, 1, 1), part_map),
        ),
        scratch_shapes=[
            pltpu.VMEM((n_mel, T), jnp.float32),       # macc
            pltpu.VMEM((1, Tg), jnp.float32),          # gacc
            pltpu.VMEM((T_dec, T_enc), jnp.float32),   # aacc
        ],
    )

    # Advisory cost hint: memory-bound loss reduction.
    mel_elems = B * n_mel * T
    align_elems = B * T_dec * T_enc
    gate_elems = B * Tg
    input_bytes = (3 * mel_elems * mel_out.dtype.itemsize
                   + align_elems * alignment_out.dtype.itemsize
                   + B * At_enc * At_dec * alignment_target.dtype.itemsize
                   + 2 * gate_elems * gate_out.dtype.itemsize)
    cost = pl.CostEstimate(
        flops=int(7 * mel_elems + 3 * align_elems + 10 * gate_elems),
        transcendentals=int(4 * gate_elems),
        bytes_accessed=int(input_bytes + 3 * n_split * 4),
    )

    kernel = functools.partial(
        _tacotron2_loss_kernel,
        pos_weight=float(pos_weight),
        loss_func=loss_func,
    )

    mel_p, gate_p, align_p = pl.pallas_call(
        kernel,
        grid_spec=grid_spec,
        out_shape=(
            jax.ShapeDtypeStruct((n_split, 1, 1), jnp.float32),
            jax.ShapeDtypeStruct((n_split, 1, 1), jnp.float32),
            jax.ShapeDtypeStruct((n_split, 1, 1), jnp.float32),
        ),
        cost_estimate=cost,
        compiler_params=pltpu.CompilerParams(
            dimension_semantics=("parallel", "arbitrary"),
            vmem_limit_bytes=48 * 1024 * 1024,
        ),
    )(mel_out, mel_out_postnet, mel_target,
      gate_out3, gate_target3,
      alignment_out, alignment_target)

    # ---- combine per-core partials + final normalizations (scalar work) -----
    mel_sum = jnp.sum(mel_p)
    gate_sum = jnp.sum(gate_p)
    align_sum = jnp.sum(align_p)

    if mean_without_padding:
        # reduction='sum' then divide by output_lengths.sum() * n_mel_channels
        # TODO(synk): like the PyTorch module, padded frames are not masked;
        # only the divisor uses output_lengths.
        denom = jnp.sum(output_lengths).astype(jnp.float32) * jnp.float32(n_mel)
        mel_loss = mel_sum / denom
    else:
        mel_loss = mel_sum / jnp.float32(B * n_mel * T)

    gate_loss = gate_sum / jnp.float32(Bg * Tg)

    if alignment_encoderwise_mean:
        align_loss = align_sum / jnp.float32(B * T_dec * T_enc)
    else:
        align_loss = align_sum / jnp.float32(
            alignment_target.shape[0] * alignment_target.shape[2])
        align_loss = align_loss * jnp.float32(alignment_loss_weight)

    loss = mel_loss + gate_loss + align_loss
    return loss, gate_loss, align_loss


# ---------------------------------------------------------------------------
# Pure-JAX reference for verification
# ---------------------------------------------------------------------------
def _reference(model_output, targets):
    mel_out, mel_post, gate_out, align_out = [a.astype(jnp.float32) for a in model_output]
    mel_tgt, gate_tgt, out_lens, align_tgt = targets
    mel_tgt = mel_tgt.astype(jnp.float32)
    gate_tgt = gate_tgt.astype(jnp.float32)
    align_tgt = align_tgt.astype(jnp.float32)

    mel_loss = jnp.sum((mel_out - mel_tgt) ** 2) + jnp.sum((mel_post - mel_tgt) ** 2)
    mel_loss = mel_loss / (jnp.sum(out_lens).astype(jnp.float32) * mel_out.shape[1])

    x = gate_out.reshape(-1)
    y = gate_tgt.reshape(-1)
    sp = lambda v: jnp.maximum(v, 0.0) + jnp.log(1.0 + jnp.exp(-jnp.abs(v)))
    bce = GATE_POSITIVE_WEIGHT * y * sp(-x) + (1.0 - y) * sp(x)
    gate_loss = jnp.mean(bce)

    a = jnp.transpose(align_out, (0, 2, 1))
    align_loss = jnp.sum((a - align_tgt) ** 2)
    align_loss = align_loss / (align_tgt.shape[0] * align_tgt.shape[2])
    align_loss = align_loss * ALIGNMENT_LOSS_WEIGHT

    return mel_loss + gate_loss + align_loss, gate_loss, align_loss


if __name__ == "__main__":
    key = jax.random.PRNGKey(0)
    B, n_mel, T, T_enc = 2, 4, 16, 8
    ks = jax.random.split(key, 7)

    mel_out = jax.random.normal(ks[0], (B, n_mel, T), jnp.float32)
    mel_out_postnet = jax.random.normal(ks[1], (B, n_mel, T), jnp.float32)
    gate_out = jax.random.normal(ks[2], (B, T), jnp.float32)
    alignment_out = jax.random.uniform(ks[3], (B, T, T_enc), jnp.float32)

    mel_target = jax.random.normal(ks[4], (B, n_mel, T), jnp.float32)
    gate_target = (jax.random.uniform(ks[5], (B, T)) > 0.8).astype(jnp.float32)
    output_lengths = jnp.array([16, 12], dtype=jnp.int32)
    alignment_target = jax.random.uniform(ks[6], (B, T_enc, T), jnp.float32)

    model_output = (mel_out, mel_out_postnet, gate_out, alignment_out)
    targets = (mel_target, gate_target, output_lengths, alignment_target)

    loss, gate_loss, align_loss = tacotron2_loss(model_output, targets)
    jax.block_until_ready((loss, gate_loss, align_loss))

    ref_loss, ref_gate, ref_align = _reference(model_output, targets)
    assert jnp.allclose(loss, ref_loss, rtol=1e-5, atol=1e-5), (loss, ref_loss)
    assert jnp.allclose(gate_loss, ref_gate, rtol=1e-5, atol=1e-5), (gate_loss, ref_gate)
    assert jnp.allclose(align_loss, ref_align, rtol=1e-5, atol=1e-5), (align_loss, ref_align)

    print("KERNEL_OK")
</pallas_src>

<mosaic_0001>
module attributes {stable_mosaic.version = 11 : i64} {
  func.func @_tacotron2_loss_kernel(%arg0: i32, %arg1: i32, %arg2: memref<1x4x16xf32, #tpu.memory_space<vmem>>, %arg3: memref<1x4x16xf32, #tpu.memory_space<vmem>>, %arg4: memref<1x4x16xf32, #tpu.memory_space<vmem>>, %arg5: memref<1x1x16xf32, #tpu.memory_space<vmem>>, %arg6: memref<1x1x16xf32, #tpu.memory_space<vmem>>, %arg7: memref<1x16x8xf32, #tpu.memory_space<vmem>>, %arg8: memref<1x8x16xf32, #tpu.memory_space<vmem>>, %arg9: memref<1x1x1xf32, #tpu.memory_space<vmem>>, %arg10: memref<1x1x1xf32, #tpu.memory_space<vmem>>, %arg11: memref<1x1x1xf32, #tpu.memory_space<vmem>>, %arg12: memref<4x16xf32, #tpu.memory_space<vmem>>, %arg13: memref<1x16xf32, #tpu.memory_space<vmem>>, %arg14: memref<16x8xf32, #tpu.memory_space<vmem>>) attributes {dimension_semantics = [#tpu.dimension_semantics<parallel>, #tpu.dimension_semantics<arbitrary>], iteration_bounds = array<i64: 2, 1>, scalar_prefetch = 0 : i64, scratch_operands = 3 : i64, tpu.core_type = #tpu.core_type<tc>, window_params = [{transform_indices = @transform_0, window_bounds = array<i64: 1, 4, 16>}, {transform_indices = @transform_1, window_bounds = array<i64: 1, 4, 16>}, {transform_indices = @transform_2, window_bounds = array<i64: 1, 4, 16>}, {transform_indices = @transform_3, window_bounds = array<i64: 1, 1, 16>}, {transform_indices = @transform_4, window_bounds = array<i64: 1, 1, 16>}, {transform_indices = @transform_5, window_bounds = array<i64: 1, 16, 8>}, {transform_indices = @transform_6, window_bounds = array<i64: 1, 8, 16>}, {transform_indices = @transform_7, window_bounds = array<i64: 1, 1, 1>}, {transform_indices = @transform_8, window_bounds = array<i64: 1, 1, 1>}, {transform_indices = @transform_9, window_bounds = array<i64: 1, 1, 1>}]} {
    %c0_i32 = arith.constant 0 : i32
    %0 = arith.cmpi eq, %arg1, %c0_i32 : i32
    %1 = arith.extui %0 : i1 to i32
    %c0_i32_0 = arith.constant 0 : i32
    %2 = arith.cmpi ne, %1, %c0_i32_0 : i32
    scf.if %2 {
      %cst_46 = arith.constant 0.000000e+00 : f32
      %62 = vector.broadcast %cst_46 : f32 to vector<4x16xf32>
      %c0_47 = arith.constant 0 : index
      %c0_48 = arith.constant 0 : index
      %63 = vector.load %arg12[%c0_47, %c0_48] : memref<4x16xf32, #tpu.memory_space<vmem>>, vector<4x16xf32>
      tpu.vector_store %arg12[%c0_47, %c0_48], %62 {strides = array<i32>} : memref<4x16xf32, #tpu.memory_space<vmem>>, vector<4x16xf32>,
      %cst_49 = arith.constant 0.000000e+00 : f32
      %64 = vector.broadcast %cst_49 : f32 to vector<1x16xf32>
      %c0_50 = arith.constant 0 : index
      %c0_51 = arith.constant 0 : index
      %65 = vector.load %arg13[%c0_50, %c0_51] : memref<1x16xf32, #tpu.memory_space<vmem>>, vector<1x16xf32>
      tpu.vector_store %arg13[%c0_50, %c0_51], %64 {strides = array<i32>} : memref<1x16xf32, #tpu.memory_space<vmem>>, vector<1x16xf32>,
      %cst_52 = arith.constant 0.000000e+00 : f32
      %66 = vector.broadcast %cst_52 : f32 to vector<16x8xf32>
      %c0_53 = arith.constant 0 : index
      %c0_54 = arith.constant 0 : index
      %67 = vector.load %arg14[%c0_53, %c0_54] : memref<16x8xf32, #tpu.memory_space<vmem>>, vector<16x8xf32>
      tpu.vector_store %arg14[%c0_53, %c0_54], %66 {strides = array<i32>} : memref<16x8xf32, #tpu.memory_space<vmem>>, vector<16x8xf32>,
    } else {
    }
    %c0 = arith.constant 0 : index
    %c0_1 = arith.constant 0 : index
    %c0_2 = arith.constant 0 : index
    %3 = vector.load %arg2[%c0, %c0_1, %c0_2] : memref<1x4x16xf32, #tpu.memory_space<vmem>>, vector<1x4x16xf32>
    %c0_3 = arith.constant 0 : index
    %c0_4 = arith.constant 0 : index
    %c0_5 = arith.constant 0 : index
    %4 = vector.load %arg3[%c0_3, %c0_4, %c0_5] : memref<1x4x16xf32, #tpu.memory_space<vmem>>, vector<1x4x16xf32>
    %c0_6 = arith.constant 0 : index
    %c0_7 = arith.constant 0 : index
    %c0_8 = arith.constant 0 : index
    %5 = vector.load %arg4[%c0_6, %c0_7, %c0_8] : memref<1x4x16xf32, #tpu.memory_space<vmem>>, vector<1x4x16xf32>
    %6 = arith.subf %3, %5 : vector<1x4x16xf32>
    %7 = arith.subf %4, %5 : vector<1x4x16xf32>
    %8 = arith.mulf %6, %6 : vector<1x4x16xf32>
    %9 = arith.mulf %7, %7 : vector<1x4x16xf32>
    %10 = arith.addf %8, %9 : vector<1x4x16xf32>
    %c0_9 = arith.constant 0 : index
    %c0_10 = arith.constant 0 : index
    %11 = vector.load %arg12[%c0_9, %c0_10] : memref<4x16xf32, #tpu.memory_space<vmem>>, vector<4x16xf32>
    %cst = arith.constant dense<0.000000e+00> : vector<4x16xf32>
    %12 = vector.multi_reduction <add>, %10, %cst [0] : vector<1x4x16xf32> to vector<4x16xf32>
    %13 = arith.addf %11, %12 : vector<4x16xf32>
    %c0_11 = arith.constant 0 : index
    %c0_12 = arith.constant 0 : index
    %14 = vector.load %arg12[%c0_11, %c0_12] : memref<4x16xf32, #tpu.memory_space<vmem>>, vector<4x16xf32>
    tpu.vector_store %arg12[%c0_11, %c0_12], %13 {strides = array<i32>} : memref<4x16xf32, #tpu.memory_space<vmem>>, vector<4x16xf32>,
    %c0_13 = arith.constant 0 : index
    %c0_14 = arith.constant 0 : index
    %c0_15 = arith.constant 0 : index
    %15 = vector.load %arg7[%c0_13, %c0_14, %c0_15] : memref<1x16x8xf32, #tpu.memory_space<vmem>>, vector<1x16x8xf32>
    %c0_16 = arith.constant 0 : index
    %c0_17 = arith.constant 0 : index
    %c0_18 = arith.constant 0 : index
    %16 = vector.load %arg8[%c0_16, %c0_17, %c0_18] : memref<1x8x16xf32, #tpu.memory_space<vmem>>, vector<1x8x16xf32>
    %17 = tpu.transpose %16, [0, 2, 1] : vector<1x8x16xf32> -> vector<1x16x8xf32>
    %18 = arith.subf %15, %17 : vector<1x16x8xf32>
    %c0_19 = arith.constant 0 : index
    %c0_20 = arith.constant 0 : index
    %19 = vector.load %arg14[%c0_19, %c0_20] : memref<16x8xf32, #tpu.memory_space<vmem>>, vector<16x8xf32>
    %20 = arith.mulf %18, %18 : vector<1x16x8xf32>
    %cst_21 = arith.constant dense<0.000000e+00> : vector<16x8xf32>
    %21 = vector.multi_reduction <add>, %20, %cst_21 [0] : vector<1x16x8xf32> to vector<16x8xf32>
    %22 = arith.addf %19, %21 : vector<16x8xf32>
    %c0_22 = arith.constant 0 : index
    %c0_23 = arith.constant 0 : index
    %23 = vector.load %arg14[%c0_22, %c0_23] : memref<16x8xf32, #tpu.memory_space<vmem>>, vector<16x8xf32>
    tpu.vector_store %arg14[%c0_22, %c0_23], %22 {strides = array<i32>} : memref<16x8xf32, #tpu.memory_space<vmem>>, vector<16x8xf32>,
    %c0_24 = arith.constant 0 : index
    %c0_25 = arith.constant 0 : index
    %c0_26 = arith.constant 0 : index
    %24 = vector.load %arg5[%c0_24, %c0_25, %c0_26] : memref<1x1x16xf32, #tpu.memory_space<vmem>>, vector<1x1x16xf32>
    %c0_27 = arith.constant 0 : index
    %c0_28 = arith.constant 0 : index
    %c0_29 = arith.constant 0 : index
    %25 = vector.load %arg6[%c0_27, %c0_28, %c0_29] : memref<1x1x16xf32, #tpu.memory_space<vmem>>, vector<1x1x16xf32>
    %cst_30 = arith.constant 8.000000e+00 : f32
    %26 = vector.broadcast %cst_30 : f32 to vector<1x1x16xf32>
    %27 = arith.mulf %26, %25 : vector<1x1x16xf32>
    %cst_31 = arith.constant 0.000000e+00 : f32
    %28 = vector.broadcast %cst_31 : f32 to vector<1x1x16xf32>
    %29 = arith.subf %28, %24 : vector<1x1x16xf32>
    %cst_32 = arith.constant 0.000000e+00 : f32
    %30 = vector.broadcast %cst_32 : f32 to vector<1x1x16xf32>
    %31 = arith.maximumf %29, %30 : vector<1x1x16xf32>
    %32 = math.absf %29 : vector<1x1x16xf32>
    %cst_33 = arith.constant 0.000000e+00 : f32
    %33 = vector.broadcast %cst_33 : f32 to vector<1x1x16xf32>
    %34 = arith.subf %33, %32 : vector<1x1x16xf32>
    %35 = math.exp %34 : vector<1x1x16xf32>
    %cst_34 = arith.constant 1.000000e+00 : f32
    %36 = vector.broadcast %cst_34 : f32 to vector<1x1x16xf32>
    %37 = arith.addf %36, %35 : vector<1x1x16xf32>
    %38 = math.log %37 : vector<1x1x16xf32>
    %39 = arith.addf %31, %38 : vector<1x1x16xf32>
    %40 = arith.mulf %27, %39 : vector<1x1x16xf32>
    %cst_35 = arith.constant 1.000000e+00 : f32
    %41 = vector.broadcast %cst_35 : f32 to vector<1x1x16xf32>
    %42 = arith.subf %41, %25 : vector<1x1x16xf32>
    %cst_36 = arith.constant 0.000000e+00 : f32
    %43 = vector.broadcast %cst_36 : f32 to vector<1x1x16xf32>
    %44 = arith.maximumf %24, %43 : vector<1x1x16xf32>
    %45 = math.absf %24 : vector<1x1x16xf32>
    %cst_37 = arith.constant 0.000000e+00 : f32
    %46 = vector.broadcast %cst_37 : f32 to vector<1x1x16xf32>
    %47 = arith.subf %46, %45 : vector<1x1x16xf32>
    %48 = math.exp %47 : vector<1x1x16xf32>
    %cst_38 = arith.constant 1.000000e+00 : f32
    %49 = vector.broadcast %cst_38 : f32 to vector<1x1x16xf32>
    %50 = arith.addf %49, %48 : vector<1x1x16xf32>
    %51 = math.log %50 : vector<1x1x16xf32>
    %52 = arith.addf %44, %51 : vector<1x1x16xf32>
    %53 = arith.mulf %42, %52 : vector<1x1x16xf32>
    %54 = arith.addf %40, %53 : vector<1x1x16xf32>
    %c0_39 = arith.constant 0 : index
    %c0_40 = arith.constant 0 : index
    %55 = vector.load %arg13[%c0_39, %c0_40] : memref<1x16xf32, #tpu.memory_space<vmem>>, vector<1x16xf32>
    %cst_41 = arith.constant dense<0.000000e+00> : vector<1x16xf32>
    %56 = vector.multi_reduction <add>, %54, %cst_41 [0] : vector<1x1x16xf32> to vector<1x16xf32>
    %57 = arith.addf %55, %56 : vector<1x16xf32>
    %c0_42 = arith.constant 0 : index
    %c0_43 = arith.constant 0 : index
    %58 = vector.load %arg13[%c0_42, %c0_43] : memref<1x16xf32, #tpu.memory_space<vmem>>, vector<1x16xf32>
    tpu.vector_store %arg13[%c0_42, %c0_43], %57 {strides = array<i32>} : memref<1x16xf32, #tpu.memory_space<vmem>>, vector<1x16xf32>,
    %c0_i32_44 = arith.constant 0 : i32
    %59 = arith.cmpi eq, %arg1, %c0_i32_44 : i32
    %60 = arith.extui %59 : i1 to i32
    %c0_i32_45 = arith.constant 0 : i32
    %61 = arith.cmpi ne, %60, %c0_i32_45 : i32
    scf.if %61 {
      %c0_46 = arith.constant 0 : index
      %c0_47 = arith.constant 0 : index
      %62 = vector.load %arg12[%c0_46, %c0_47] : memref<4x16xf32, #tpu.memory_space<vmem>>, vector<4x16xf32>
      %63 = vector.shape_cast %62 : vector<4x16xf32> to vector<1x4x16xf32>
      %cst_48 = arith.constant dense<0.000000e+00> : vector<1xf32>
      %64 = vector.multi_reduction <add>, %63, %cst_48 [1, 2] : vector<1x4x16xf32> to vector<1xf32>
      %65 = vector.shape_cast %64 : vector<1xf32> to vector<1x1x1xf32>
      %66 = vector.extract %65[0, 0, 0] : f32 from vector<1x1x1xf32>
      %67 = vector.broadcast %66 : f32 to vector<1x1xf32>
      %c0_49 = arith.constant 0 : index
      %c0_50 = arith.constant 0 : index
      %c0_51 = arith.constant 0 : index
      %68 = vector.load %arg9[%c0_49, %c0_50, %c0_51] : memref<1x1x1xf32, #tpu.memory_space<vmem>>, vector<1x1x1xf32>
      %69 = vector.shape_cast %68 : vector<1x1x1xf32> to vector<1x1xf32>
      %70 = vector.shape_cast %67 : vector<1x1xf32> to vector<1x1x1xf32>
      tpu.vector_store %arg9[%c0_49, %c0_50, %c0_51], %70 {strides = array<i32>} : memref<1x1x1xf32, #tpu.memory_space<vmem>>, vector<1x1x1xf32>,
      %c0_52 = arith.constant 0 : index
      %c0_53 = arith.constant 0 : index
      %71 = vector.load %arg13[%c0_52, %c0_53] : memref<1x16xf32, #tpu.memory_space<vmem>>, vector<1x16xf32>
      %72 = vector.shape_cast %71 : vector<1x16xf32> to vector<1x1x16xf32>
      %cst_54 = arith.constant dense<0.000000e+00> : vector<1xf32>
      %73 = vector.multi_reduction <add>, %72, %cst_54 [1, 2] : vector<1x1x16xf32> to vector<1xf32>
      %74 = vector.shape_cast %73 : vector<1xf32> to vector<1x1x1xf32>
      %75 = vector.extract %74[0, 0, 0] : f32 from vector<1x1x1xf32>
      %76 = vector.broadcast %75 : f32 to vector<1x1xf32>
      %c0_55 = arith.constant 0 : index
      %c0_56 = arith.constant 0 : index
      %c0_57 = arith.constant 0 : index
      %77 = vector.load %arg10[%c0_55, %c0_56, %c0_57] : memref<1x1x1xf32, #tpu.memory_space<vmem>>, vector<1x1x1xf32>
      %78 = vector.shape_cast %77 : vector<1x1x1xf32> to vector<1x1xf32>
      %79 = vector.shape_cast %76 : vector<1x1xf32> to vector<1x1x1xf32>
      tpu.vector_store %arg10[%c0_55, %c0_56, %c0_57], %79 {strides = array<i32>} : memref<1x1x1xf32, #tpu.memory_space<vmem>>, vector<1x1x1xf32>,
      %c0_58 = arith.constant 0 : index
      %c0_59 = arith.constant 0 : index
      %80 = vector.load %arg14[%c0_58, %c0_59] : memref<16x8xf32, #tpu.memory_space<vmem>>, vector<16x8xf32>
      %81 = vector.shape_cast %80 : vector<16x8xf32> to vector<1x16x8xf32>
      %cst_60 = arith.constant dense<0.000000e+00> : vector<1xf32>
      %82 = vector.multi_reduction <add>, %81, %cst_60 [1, 2] : vector<1x16x8xf32> to vector<1xf32>
      %83 = vector.shape_cast %82 : vector<1xf32> to vector<1x1x1xf32>
      %84 = vector.extract %83[0, 0, 0] : f32 from vector<1x1x1xf32>
      %85 = vector.broadcast %84 : f32 to vector<1x1xf32>
      %c0_61 = arith.constant 0 : index
      %c0_62 = arith.constant 0 : index
      %c0_63 = arith.constant 0 : index
      %86 = vector.load %arg11[%c0_61, %c0_62, %c0_63] : memref<1x1x1xf32, #tpu.memory_space<vmem>>, vector<1x1x1xf32>
      %87 = vector.shape_cast %86 : vector<1x1x1xf32> to vector<1x1xf32>
      %88 = vector.shape_cast %85 : vector<1x1xf32> to vector<1x1x1xf32>
      tpu.vector_store %arg11[%c0_61, %c0_62, %c0_63], %88 {strides = array<i32>} : memref<1x1x1xf32, #tpu.memory_space<vmem>>, vector<1x1x1xf32>,
    } else {
    }
    return
  }
  func.func @transform_0(%arg0: i32, %arg1: i32) -> (i32, i32, i32) {
    %c1_i32 = arith.constant 1 : i32
    %0 = arith.muli %arg0, %c1_i32 : i32
    %1 = arith.addi %0, %arg1 : i32
    %c0_i32 = arith.constant 0 : i32
    %c0_i32_0 = arith.constant 0 : i32
    %c0_i32_1 = arith.constant 0 : i32
    return %1, %c0_i32, %c0_i32_0 : i32, i32, i32
  }
  func.func @transform_1(%arg0: i32, %arg1: i32) -> (i32, i32, i32) {
    %c1_i32 = arith.constant 1 : i32
    %0 = arith.muli %arg0, %c1_i32 : i32
    %1 = arith.addi %0, %arg1 : i32
    %c0_i32 = arith.constant 0 : i32
    %c0_i32_0 = arith.constant 0 : i32
    %c0_i32_1 = arith.constant 0 : i32
    return %1, %c0_i32, %c0_i32_0 : i32, i32, i32
  }
  func.func @transform_2(%arg0: i32, %arg1: i32) -> (i32, i32, i32) {
    %c1_i32 = arith.constant 1 : i32
    %0 = arith.muli %arg0, %c1_i32 : i32
    %1 = arith.addi %0, %arg1 : i32
    %c0_i32 = arith.constant 0 : i32
    %c0_i32_0 = arith.constant 0 : i32
    %c0_i32_1 = arith.constant 0 : i32
    return %1, %c0_i32, %c0_i32_0 : i32, i32, i32
  }
  func.func @transform_3(%arg0: i32, %arg1: i32) -> (i32, i32, i32) {
    %c1_i32 = arith.constant 1 : i32
    %0 = arith.muli %arg0, %c1_i32 : i32
    %1 = arith.addi %0, %arg1 : i32
    %c0_i32 = arith.constant 0 : i32
    %c0_i32_0 = arith.constant 0 : i32
    %c0_i32_1 = arith.constant 0 : i32
    return %1, %c0_i32, %c0_i32_0 : i32, i32, i32
  }
  func.func @transform_4(%arg0: i32, %arg1: i32) -> (i32, i32, i32) {
    %c1_i32 = arith.constant 1 : i32
    %0 = arith.muli %arg0, %c1_i32 : i32
    %1 = arith.addi %0, %arg1 : i32
    %c0_i32 = arith.constant 0 : i32
    %c0_i32_0 = arith.constant 0 : i32
    %c0_i32_1 = arith.constant 0 : i32
    return %1, %c0_i32, %c0_i32_0 : i32, i32, i32
  }
  func.func @transform_5(%arg0: i32, %arg1: i32) -> (i32, i32, i32) {
    %c1_i32 = arith.constant 1 : i32
    %0 = arith.muli %arg0, %c1_i32 : i32
    %1 = arith.addi %0, %arg1 : i32
    %c0_i32 = arith.constant 0 : i32
    %c0_i32_0 = arith.constant 0 : i32
    %c0_i32_1 = arith.constant 0 : i32
    return %1, %c0_i32, %c0_i32_0 : i32, i32, i32
  }
  func.func @transform_6(%arg0: i32, %arg1: i32) -> (i32, i32, i32) {
    %c1_i32 = arith.constant 1 : i32
    %0 = arith.muli %arg0, %c1_i32 : i32
    %1 = arith.addi %0, %arg1 : i32
    %c0_i32 = arith.constant 0 : i32
    %c0_i32_0 = arith.constant 0 : i32
    %c0_i32_1 = arith.constant 0 : i32
    return %1, %c0_i32, %c0_i32_0 : i32, i32, i32
  }
  func.func @transform_7(%arg0: i32, %arg1: i32) -> (i32, i32, i32) {
    %c0_i32 = arith.constant 0 : i32
    %c0_i32_0 = arith.constant 0 : i32
    %c0_i32_1 = arith.constant 0 : i32
    return %arg0, %c0_i32, %c0_i32_0 : i32, i32, i32
  }
  func.func @transform_8(%arg0: i32, %arg1: i32) -> (i32, i32, i32) {
    %c0_i32 = arith.constant 0 : i32
    %c0_i32_0 = arith.constant 0 : i32
    %c0_i32_1 = arith.constant 0 : i32
    return %arg0, %c0_i32, %c0_i32_0 : i32, i32, i32
  }
  func.func @transform_9(%arg0: i32, %arg1: i32) -> (i32, i32, i32) {
    %c0_i32 = arith.constant 0 : i32
    %c0_i32_0 = arith.constant 0 : i32
    %c0_i32_1 = arith.constant 0 : i32
    return %arg0, %c0_i32, %c0_i32_0 : i32, i32, i32
  }
}

</mosaic_0001>

<bundles_post_ra>
// kernel: tpu_custom_call.1
= control target key start
LH: loop header
LB: loop body
LE: loop exit
PB: predicated region body
PF: predicated region fallthrough
CT: control target
= control target key end

     0   :  { %s951_s30 = smov 0   ;;  %s953_s10 = smov 0   ;;  %s1033_s0 = inlined_call_operand.vmem [shape: f32[2,4,16], index: 0, kind: input, shape index: {}]   ;;  %s1034_s1 = inlined_call_operand.vmem [shape: f32[2,4,16], index: 1, kind: input, shape index: {}]   ;;  %s1035_s2 = inlined_call_operand.vmem [shape: f32[2,4,16], index: 2, kind: input, shape index: {}]   ;;  %s1036_s3 = inlined_call_operand.vmem [shape: f32[2,1,16], index: 3, kind: input, shape index: {}]   ;;  %s1037_s4 = inlined_call_operand.vmem [shape: f32[2,1,16], index: 4, kind: input, shape index: {}]   ;;  %s1038_s5 = inlined_call_operand.vmem [shape: f32[2,16,8], index: 5, kind: input, shape index: {}]   ;;  %s1039_s6 = inlined_call_operand.vmem [shape: f32[2,8,16], index: 6, kind: input, shape index: {}]   ;;  %s1040_s7 = inlined_call_operand.vmem [shape: f32[2,1,1], index: 7, kind: output, shape index: {0}]   ;;  %s1041_s8 = inlined_call_operand.vmem [shape: f32[2,1,1], index: 8, kind: output, shape index: {1}]   ;;  %s1042_s9 = inlined_call_operand.vmem [shape: f32[2,1,1], index: 9, kind: output, shape index: {2}]  }
   0x1   :  { %s955_s11 = smov 0  }
   0x2 LB: > { %s32_s12 = sadd.s32 1, %s894_s10  ;;  %p827_p0 = scmp.ge.s32.totalorder %s898_s11, 1  ;;  %s898_s11 = sphi %s955_s11, %s20_s11   ;;  %s894_s10 = sphi %s953_s10, %s1044_s10   ;;  %s890_s30 = sphi %s951_s30, %s1043_s30  }
   0x3   : > { %p34_p1 = scmp.ge.s32.totalorder %s32_s12, 2  ;;  %p384_p2 = scmp.lt.s32.totalorder %s898_s11, 3 }
   0x5   : > { %s1046_s12 = smov (%p34_p1, %s32_s12), 0  ;;  %p385_p3 = pnand %p827_p0, %p384_p2 }
   0x6   : > { %p454_p4 = scmp.lt.s32.totalorder (!%p385_p3), %s890_s30, 1 }
   0x7   : > { %388 = sbr.rel (%p385_p3) target bundleno = 364 (0x16c), region = 48 }
   0xc   : > { %vm511_vm0 = vcmask 64512   ;;  %vm509_vm1 = vcmask 122880   ;;  %vm507_vm2 = vcmask 125952   ;;  %v900_v0 = vmov 0.0   ;;  %s1048_s30 = smov (!%p454_p4, %s890_s30), 1 }
   0xd   : > { %512 = vst.msk [vmem:[#allocation4] sm:$0xff] %vm511_vm0, %v900_v0  ;;  %513 = vst.msk [vmem:[#allocation4 + $0x8] sm:$0xff] %vm511_vm0, %v900_v0  ;;  %s833_s13 = sshll.u32 %s1048_s30, 3  ;;  %s474_s19 = scalar_lea.vmem %s1036_s3, %s1048_s30  ;;  %vm621_vm3 = vcmask 0  }
   0xe   : > { %510 = vst.msk [vmem:[#allocation3] sm:$0x1] %vm509_vm1, %v900_v0  ;;  %s492_s16 = scalar_lea.vmem %s1039_s6, %s833_s13  ;;  %v575_v2 = vld [vmem:[%s474_s19] sm:$0x1]  ;;  %s828_s20 = sshll.u32 %s1048_s30, 2 }
   0xf   : > { %508 = vst.msk [vmem:[#allocation2] sm:$0xf] %vm507_vm2, %v900_v0  ;;  %v529_v1 = vld [vmem:[%s492_s16] sm:$0xff]  ;;  %v578_v3 = vsub.f32 0.0, %v575_v2  ;;  %v591_v4 = vand.u32 2147483647, %v575_v2  ;;  %s457_s23 = scalar_lea.vmem %s1033_s0, %s828_s20  ;;  %s463_s26 = scalar_lea.vmem %s1034_s1, %s828_s20 }
  0x10   : > { %530 = vxpose.xlu0.b32.start.end [1/1] (short) (narrow) %v529_v1, 16  ;;  %s469_s29 = scalar_lea.vmem %s1035_s2, %s828_s20  ;;  %v514_v6 = vld [vmem:[%s457_s23] sm:$0xf]  ;;  %s479_s15 = scalar_lea.vmem %s1037_s4, %s1048_s30  ;;  %v590_v25 = vmax.f32 %v575_v2, 0.0 }
  0x11   : > { %v580_v5 = vand.u32 2147483647, %v578_v3  ;;  %v592_v7 = vsub.f32 0.0, %v591_v4  ;;  %v515_v8 = vld [vmem:[%s463_s26] sm:$0xf]  ;;  %v579_v27 = vmax.f32 %v578_v3, 0.0  ;;  %s496_s22 = scalar_lea.vmem %s1040_s7, %s1048_s30  ;;  %s499_s26 = scalar_lea.vmem %s1041_s8, %s1048_s30 }
  0x12   : > { %v516_v9 = vld [vmem:[%s469_s29] sm:$0xf]  ;;  %s836_s16 = sshll.u32 %s1048_s30, 4  ;;  %s502_s13 = scalar_lea.vmem %s1042_s9, %s1048_s30 }
  0x13   : > { %v581_v10 = vsub.f32 0.0, %v580_v5  ;;  %v517_v11 = vsub.f32 %v514_v6, %v516_v9  ;;  %v518_v12 = vsub.f32 %v515_v8, %v516_v9  ;;  %v593_v13 = vmul.f32 1.442695, %v592_v7  ;;  %v576_v24 = vld [vmem:[%s479_s15] sm:$0x1]  ;;  %s486_s19 = scalar_lea.vmem %s1038_s5, %s836_s16 }
  0x14   : > { %v589_v29 = vsub.f32 1.0, %v576_v24  ;;  %v577_v31 = vmul.f32 8.0, %v576_v24  ;;  %v527_v44 = vld [vmem:[%s486_s19] sm:$0xff]  ;;  %v528_v48 = vld [vmem:[%s486_s19 + $0x8] sm:$0xff] }
  0x15   : > { %v582_v14 = vmul.f32 1.442695, %v581_v10  ;;  %v519_v15 = vmul.f32 %v517_v11, %v517_v11  ;;  %v520_v16 = vmul.f32 %v518_v12, %v518_v12  ;;  %868 = vpow2.f32 %v593_v13  ;;  %v601_v38 = vld [vmem:[#allocation3] sm:$0x1]  ;;  %v564_v47 = vld [vmem:[#allocation4] sm:$0xff]  ;;  %v565_v53 = vld [vmem:[#allocation4 + $0x8] sm:$0xff] }
  0x16   : > { %v522_v17 = vld [vmem:[#allocation2] sm:$0xf] }
  0x17   : > { %870 = vpow2.f32 %v582_v14  ;;  %v521_v18 = vadd.f32 %v520_v16, %v519_v15 }
  0x19   : > { %v524_v19 = vadd.f32 %v522_v17, %v521_v18 }
  0x1b   : > { %526 = vst.msk [vmem:[#allocation2] sm:$0xf] %vm507_vm2, %v524_v19 }
  0x22   : > { %v869_v20 = vpop.eup %868  ;;  %v609_v37 = vld [vmem:[#allocation2] sm:$0xf] }
  0x23   : > { %v595_v22 = vadd.f32 1.0, %v869_v20  ;;  %v610_v40 = vsel %vm507_vm2, %v609_v37, 0.0 }
  0x24   : > { %v871_v21 = vpop.eup %870 }
  0x25   : > { %v584_v23 = vadd.f32 1.0, %v871_v21  ;;  %872 = vlog2.f32 %v595_v22 }
  0x27   : > { %874 = vlog2.f32 %v584_v23 }
  0x32   : > { %v873_v26 = vpop.eup %872 }
  0x33   : > { %v597_v30 = vmul.f32 0.6931472, %v873_v26 }
  0x34   : > { %v875_v28 = vpop.eup %874 }
  0x35   : > { %v586_v32 = vmul.f32 0.6931472, %v875_v28  ;;  %v598_v33 = vadd.f32 %v597_v30, %v590_v25 }
  0x37   : > { %v587_v34 = vadd.f32 %v586_v32, %v579_v27  ;;  %v599_v35 = vmul.f32 %v598_v33, %v589_v29 }
  0x39   : > { %v588_v36 = vmul.f32 %v587_v34, %v577_v31 }
  0x3b   : > { %v600_v39 = vadd.f32 %v599_v35, %v588_v36 }
  0x3d   : > { %v603_v41 = vadd.f32 %v601_v38, %v600_v39 }
  0x3f   : > { %605 = vst.msk [vmem:[#allocation3] sm:$0x1] %vm509_vm1, %v603_v41 }
  0x41   : > { %611 = vadd.xlane.f32.xlu0 %v610_v40 }
  0x46   : > { %v623_v42 = vld [vmem:[#allocation3] sm:$0x1] }
  0x47   : > { %v624_v43 = vsel %vm509_vm1, %v623_v42, 0.0 }
  0x48   : > { %625 = vadd.xlane.f32.xlu1 %v624_v43 }
  0x8c   : > { %v546_v45 = vpop.trf.xlu0 }
  0x8d   : > { %v562_v46 = vsub.f32 %v527_v44, %v546_v45 }
  0x8f   : > { %v566_v49 = vmul.f32 %v562_v46, %v562_v46 }
  0x90   : > { %v547_v50 = vpop.trf.xlu0 }
  0x91   : > { %v570_v51 = vadd.f32 %v566_v49, %v564_v47  ;;  %v563_v52 = vsub.f32 %v528_v48, %v547_v50 }
  0x93   : > { %573 = vst.msk [vmem:[#allocation4] sm:$0xff] %vm511_vm0, %v570_v51  ;;  %v567_v54 = vmul.f32 %v563_v52, %v563_v52 }
  0x95   : > { %v571_v55 = vadd.f32 %v567_v54, %v565_v53 }
  0x97   : > { %574 = vst.msk [vmem:[#allocation4 + $0x8] sm:$0xff] %vm511_vm0, %v571_v55 }
  0x9a   : > { %v636_v56 = vld [vmem:[#allocation4] sm:$0xff] }
  0x9b   : > { %v638_v58 = vsel %vm511_vm0, %v636_v56, 0.0 }
  0x9e   : > { %v637_v57 = vld [vmem:[#allocation4 + $0x8] sm:$0xff] }
  0x9f   : > { %v639_v59 = vsel %vm511_vm0, %v637_v57, 0.0 }
  0xa0   : > { %v640_v60 = vadd.f32 %v639_v59, %v638_v58 }
  0xa2   : > { %641 = vadd.xlane.f32.xlu1 %v640_v60 }
  0xca   : > { %v612_v61 = vpop.xlane.xlu0 %611 }
  0xcb   : > { %v613_v62 = vrot.slane %v612_v61, 4 }
  0xcd   : > { %v614_v63 = vadd.f32 %v613_v62, %v612_v61 }
  0xcf   : > { %v615_v0 = vrot.slane %v614_v63, 2 }
  0xd1   : > { %v616_v1 = vadd.f32 %v615_v0, %v614_v63  ;;  %v626_v2 = vpop.xlane.xlu1 %625 }
  0xd2   : > { %v627_v4 = vrot.slane %v626_v2, 4 }
  0xd3   : > { %v617_v3 = vrot.slane %v616_v1, 1 }
  0xd4   : > { %v628_v6 = vadd.f32 %v627_v4, %v626_v2 }
  0xd5   : > { %v618_v5 = vadd.f32 %v617_v3, %v616_v1 }
  0xd6   : > { %v629_v7 = vrot.slane %v628_v6, 2 }
  0xd7   : > { %837 = vpush %v618_v5 }
  0xd8   : > { %v630_v8 = vadd.f32 %v629_v7, %v628_v6 }
  0xda   : > { %v631_v9 = vrot.slane %v630_v8, 1 }
  0xdc   : > { %v632_v10 = vadd.f32 %v631_v9, %v630_v8 }
  0xde   : > { %839 = vpush %v632_v10 }
 0x108   : > { %s838_s23 = spop %837 }
 0x109   : > { %v620_v11 = vstv %s838_s23 }
 0x10a   : > { %622 = vst.msk [vmem:[%s496_s22] sm:$0x1] %vm621_vm3, %v620_v11 }
 0x10f   : > { %s840_s27 = spop %839 }
 0x110   : > { %v634_v12 = vstv %s840_s27 }
 0x111   : > { %635 = vst.msk [vmem:[%s499_s26] sm:$0x1] %vm621_vm3, %v634_v12 }
 0x12b   : > { %v642_v13 = vpop.xlane.xlu1 %641 }
 0x12c   : > { %v643_v14 = vrot.slane %v642_v13, 4 }
 0x12e   : > { %v644_v15 = vadd.f32 %v643_v14, %v642_v13 }
 0x130   : > { %v645_v16 = vrot.slane %v644_v15, 2 }
 0x132   : > { %v646_v17 = vadd.f32 %v645_v16, %v644_v15 }
 0x134   : > { %v647_v18 = vrot.slane %v646_v17, 1 }
 0x136   : > { %v648_v19 = vadd.f32 %v647_v18, %v646_v17 }
 0x138   : > { %841 = vpush %v648_v19 }
 0x169   : > { %s842_s14 = spop %841 }
 0x16a   : > { %v650_v20 = vstv %s842_s14 }
 0x16b   : > { %651 = vst.msk [vmem:[%s502_s13] sm:$0x1] %vm621_vm3, %v650_v20 }
 0x16c PF: > { %s20_s11 = sadd.s32 1, %s898_s11   ;;  %s1043_s30 = smov %s894_s10 }
 0x16d   : > { %p17_p5 = scmp.ge.s32.totalorder %s20_s11, 4   ;;  %s1044_s10 = smov %s1046_s12 }
 0x16f   :  { %19 = sbr.rel (!%p17_p5) target bundleno = 2 (0x2), region = 128 }

</bundles_post_ra>
